<compile_context>
chip_gen: v5e
topology: v5e:2x2
jax: 0.10.0
libtpu: 0.0.40
codegen_flags: <defaults>
</compile_context>

<pallas_src>
import jax
import jax.numpy as jnp
from jax import lax
from jax.experimental import pallas as pl
from jax.experimental.pallas import tpu as pltpu

_NEG_INF = -1e30


def _round_up(x: int, m: int) -> int:
    return ((x + m - 1) // m) * m


def _ntxent_kernel(z_q_ref, z_k_ref, bias_ref, lse_ref, m_sc, l_sc):
    qt = z_q_ref.shape[0]
    kt = z_k_ref.shape[0]
    qi = pl.program_id(0)          # query-row tile (parallel)
    ki = pl.program_id(1)          # key-column tile (reduction, last axis)
    nk = pl.num_programs(1)

    @pl.when(ki == 0)
    def _init():
        m_sc[...] = jnp.full_like(m_sc, _NEG_INF)
        l_sc[...] = jnp.zeros_like(l_sc)

    # (qt, kt) similarity block on the MXU. Both operands consumed in their natural
    # [rows, D] layout (contract last dims, no transpose), f32 accumulate. The
    # temperature scale is already folded into the operands by the wrapper.
    s = lax.dot_general(z_q_ref[...], z_k_ref[...],
                        dimension_numbers=(((1,), (1,)), ((), ())),
                        preferred_element_type=jnp.float32)

    # Padded-key mask as a single additive bias (0 valid / -1e30 padded).
    s = s + bias_ref[...]                              # (1, kt) broadcasts over rows

    # Self-similarity mask: row r must never see column r. Global-index compare is
    # all-false on off-diagonal tiles and its VPU cost hides under the EUP exp below;
    # doing it pre-accumulation avoids the small-temperature cancellation of a
    # subtract-after-exp correction.
    r_glob = qi * qt + lax.broadcasted_iota(jnp.int32, (qt, kt), 0)
    c_glob = ki * kt + lax.broadcasted_iota(jnp.int32, (qt, kt), 1)
    s = jnp.where(r_glob == c_glob, _NEG_INF, s)

    # Online (flash-style) log-sum-exp accumulation over key tiles.
    m_prev = m_sc[...]
    m_new = jnp.maximum(m_prev, jnp.max(s, axis=1, keepdims=True))
    p = jnp.exp(s - m_new)
    l_sc[...] = l_sc[...] * jnp.exp(m_prev - m_new) + jnp.sum(p, axis=1, keepdims=True)
    m_sc[...] = m_new

    # Finalize: per-row log(sum_{s != r} exp(sim_rs)). The positive logit is
    # subtracted in the wrapper (computed exactly, in f32, fused with normalization).
    @pl.when(ki == nk - 1)
    def _fin():
        lse_ref[...] = m_sc[...] + jnp.log(l_sc[...])


def ntxent_loss(z_i: jax.Array, z_j: jax.Array, temperature: float = 0.5, *,
                qt_target: int = 512, kt_target: int = 256,
                mm_dtype=jnp.bfloat16) -> jax.Array:
    """NT-Xent loss matching the PyTorch reference. z_i, z_j: [N, ...] -> [N, D].

    qt_target / kt_target: query-row / key-column tile sizes (kt multiple of 128;
        kt=256 fills the v6e/v7x MXU, 128 is fine for v5e).
    mm_dtype: MXU operand dtype (bf16 default = fast path); exp/log math stays f32.
    """
    n = z_i.shape[0]
    z_i = z_i.reshape(n, -1).astype(jnp.float32)
    z_j = z_j.reshape(n, -1).astype(jnp.float32)
    d = z_i.shape[1]
    m = 2 * n
    inv_temp = 1.0 / float(temperature)

    # Row-wise L2 normalization once, O(M*D) — matches F.normalize(z, dim=1), eps=1e-12.
    def _norm(x):
        nrm = jnp.sqrt(jnp.sum(x * x, axis=1, keepdims=True))
        return x / jnp.maximum(nrm, 1e-12)

    zi_n = _norm(z_i)
    zj_n = _norm(z_j)

    # Positive logit per row (f32, exact), fused with the normalization prologue.
    pos = inv_temp * jnp.sum(zi_n * zj_n, axis=1)      # (n,)
    pos = jnp.concatenate([pos, pos])                  # rows r and r+n share the value

    # --- tile-size selection -------------------------------------------------
    kt = min(int(kt_target), _round_up(m, 128))        # multiple of 128
    m_pad = _round_up(m, kt)
    # Keep >= 2 query tiles when there is enough work (v7x megacore balance).
    max_qt = min(int(qt_target), m_pad // 2 if m_pad >= 2 * kt else m_pad)
    qt = kt
    while qt * 2 <= max_qt and m_pad % (qt * 2) == 0:
        qt *= 2
    nq, nk = m_pad // qt, m_pad // kt

    # --- build the single shared operand -------------------------------------
    # sqrt(1/T) folded into both sides of the (shared) operand so the matmul already
    # emits temperature-scaled logits; padded rows stay zero.
    scale = float(inv_temp) ** 0.5
    z = jnp.zeros((m_pad, d), jnp.float32)
    z = z.at[:n].set(zi_n * scale).at[n:m].set(zj_n * scale)
    z = z.astype(mm_dtype)

    # Additive key-validity bias: 0 for real rows, -1e30 for padding columns.
    col = jnp.arange(m_pad)
    bias = jnp.where(col < m, 0.0, _NEG_INF).astype(jnp.float32).reshape(1, m_pad)

    # --- cost / VMEM hints ----------------------------------------------------
    itemsize = jnp.dtype(mm_dtype).itemsize
    cost = pl.CostEstimate(
        flops=2 * m_pad * m_pad * d,
        transcendentals=m_pad * m_pad,
        bytes_accessed=(nq * m_pad * d + m_pad * d) * itemsize + m_pad * 4,
    )
    in_bytes = 2 * (qt + kt) * d * itemsize            # double-buffered inputs
    s_bytes = 4 * qt * kt * 4                          # S tile + f32 temporaries
    vmem_limit = int(min(64 * 2**20, max(16 * 2**20, 2 * (in_bytes + s_bytes))))

    lse = pl.pallas_call(
        _ntxent_kernel,
        out_shape=jax.ShapeDtypeStruct((m_pad, 1), jnp.float32),
        grid_spec=pltpu.PrefetchScalarGridSpec(
            num_scalar_prefetch=0,
            grid=(nq, nk),
            in_specs=[
                pl.BlockSpec((qt, d), lambda qi, ki: (qi, 0)),   # query rows
                pl.BlockSpec((kt, d), lambda qi, ki: (ki, 0)),   # key rows
                pl.BlockSpec((1, kt), lambda qi, ki: (0, ki)),   # key-validity bias
            ],
            out_specs=pl.BlockSpec((qt, 1), lambda qi, ki: (qi, 0)),
            scratch_shapes=[
                pltpu.VMEM((qt, 1), jnp.float32),   # running max
                pltpu.VMEM((qt, 1), jnp.float32),   # running sum of exp
            ]),
        compiler_params=pltpu.CompilerParams(
            dimension_semantics=("parallel", "arbitrary"),
            vmem_limit_bytes=vmem_limit),
        cost_estimate=cost,
    )(z, z, bias)

    # Padded rows are excluded by slicing (never fed into the mean).
    lse = lse[:m, 0]
    return jnp.mean(lse - pos)


def _reference_ntxent(z_i, z_j, temperature=0.5):
    # Pure-JAX mirror of the PyTorch forward, for verification.
    n = z_i.shape[0]
    z = jnp.concatenate([z_i.reshape(n, -1), z_j.reshape(n, -1)], axis=0)
    z = z.astype(jnp.float32)
    z = z / jnp.maximum(jnp.linalg.norm(z, axis=1, keepdims=True), 1e-12)
    sim = (z @ z.T) / temperature
    m = 2 * n
    eye = jnp.eye(m, dtype=bool)
    pos = jnp.concatenate([jnp.arange(n, m), jnp.arange(0, n)])
    sim_pos = jnp.exp(jnp.sum(z * z[pos], axis=1) / temperature)
    sim_all = jnp.sum(jnp.where(eye, 0.0, jnp.exp(sim)), axis=1)
    return jnp.mean(-jnp.log(sim_pos / sim_all))


if __name__ == "__main__":
    key = jax.random.PRNGKey(0)
    k1, k2, k3, k4 = jax.random.split(key, 4)

    # Small shape consistent with the module spec (N samples, D features).
    N, D = 8, 32
    z_i = jax.random.normal(k1, (N, D), dtype=jnp.float32)
    z_j = jax.random.normal(k2, (N, D), dtype=jnp.float32)
    ref = _reference_ntxent(z_i, z_j, temperature=0.5)

    loss_bf16 = ntxent_loss(z_i, z_j, temperature=0.5)              # bf16 MXU default
    jax.block_until_ready(loss_bf16)
    assert jnp.allclose(loss_bf16, ref, rtol=5e-2, atol=5e-2), (loss_bf16, ref)

    loss_f32 = ntxent_loss(z_i, z_j, temperature=0.5, mm_dtype=jnp.float32)
    jax.block_until_ready(loss_f32)
    assert jnp.allclose(loss_f32, ref, rtol=1e-4, atol=1e-4), (loss_f32, ref)

    # Larger shape: exercises the multi-tile grid (2x2), row padding (2N not a
    # multiple of the key tile), the key-validity bias and the online LSE.
    N2, D2 = 192, 160
    z_i2 = jax.random.normal(k3, (N2, D2), dtype=jnp.float32)
    z_j2 = jax.random.normal(k4, (N2, D2), dtype=jnp.float32)
    ref2 = _reference_ntxent(z_i2, z_j2, temperature=0.5)

    loss2_bf16 = ntxent_loss(z_i2, z_j2, temperature=0.5)
    jax.block_until_ready(loss2_bf16)
    assert jnp.allclose(loss2_bf16, ref2, rtol=5e-2, atol=5e-2), (loss2_bf16, ref2)

    loss2_f32 = ntxent_loss(z_i2, z_j2, temperature=0.5, mm_dtype=jnp.float32)
    jax.block_until_ready(loss2_f32)
    assert jnp.allclose(loss2_f32, ref2, rtol=1e-4, atol=1e-4), (loss2_f32, ref2)

    # Small-temperature regime: exercises the pre-accumulation diagonal mask
    # (the old subtract-after-exp cancelled catastrophically here).
    ref3 = _reference_ntxent(z_i2, z_j2, temperature=0.05)
    loss3 = ntxent_loss(z_i2, z_j2, temperature=0.05, mm_dtype=jnp.float32)
    jax.block_until_ready(loss3)
    assert jnp.allclose(loss3, ref3, rtol=1e-4, atol=1e-4), (loss3, ref3)

    print("KERNEL_OK")
</pallas_src>

<mosaic_0001>
module attributes {stable_mosaic.version = 11 : i64} {
  func.func @_ntxent_kernel(%arg0: i32, %arg1: i32, %arg2: memref<128x32xbf16, #tpu.memory_space<vmem>>, %arg3: memref<128x32xbf16, #tpu.memory_space<vmem>>, %arg4: memref<1x128xf32, #tpu.memory_space<vmem>>, %arg5: memref<128x1xf32, #tpu.memory_space<vmem>>, %arg6: memref<128x1xf32, #tpu.memory_space<vmem>>, %arg7: memref<128x1xf32, #tpu.memory_space<vmem>>) attributes {dimension_semantics = [#tpu.dimension_semantics<parallel>, #tpu.dimension_semantics<arbitrary>], iteration_bounds = array<i64: 1, 1>, scalar_prefetch = 0 : i64, scratch_operands = 2 : i64, tpu.core_type = #tpu.core_type<tc>, window_params = [{transform_indices = @transform_0, window_bounds = array<i64: 128, 32>}, {transform_indices = @transform_1, window_bounds = array<i64: 128, 32>}, {transform_indices = @transform_2, window_bounds = array<i64: 1, 128>}, {transform_indices = @transform_3, window_bounds = array<i64: 128, 1>}]} {
    %c0_i32 = arith.constant 0 : i32
    %0 = arith.cmpi eq, %arg1, %c0_i32 : i32
    %1 = arith.extui %0 : i1 to i32
    %c0_i32_0 = arith.constant 0 : i32
    %2 = arith.cmpi ne, %1, %c0_i32_0 : i32
    scf.if %2 {
      %cst_20 = arith.constant -1.000000e+30 : f32
      %39 = vector.broadcast %cst_20 : f32 to vector<128x1xf32>
      %c0_21 = arith.constant 0 : index
      %c0_22 = arith.constant 0 : index
      %40 = vector.load %arg6[%c0_21, %c0_22] : memref<128x1xf32, #tpu.memory_space<vmem>>, vector<128x1xf32>
      tpu.vector_store %arg6[%c0_21, %c0_22], %39 {strides = array<i32>} : memref<128x1xf32, #tpu.memory_space<vmem>>, vector<128x1xf32>,
      %cst_23 = arith.constant 0.000000e+00 : f32
      %41 = vector.broadcast %cst_23 : f32 to vector<128x1xf32>
      %c0_24 = arith.constant 0 : index
      %c0_25 = arith.constant 0 : index
      %42 = vector.load %arg7[%c0_24, %c0_25] : memref<128x1xf32, #tpu.memory_space<vmem>>, vector<128x1xf32>
      tpu.vector_store %arg7[%c0_24, %c0_25], %41 {strides = array<i32>} : memref<128x1xf32, #tpu.memory_space<vmem>>, vector<128x1xf32>,
    } else {
    }
    %c0 = arith.constant 0 : index
    %c0_1 = arith.constant 0 : index
    %3 = vector.load %arg2[%c0, %c0_1] : memref<128x32xbf16, #tpu.memory_space<vmem>>, vector<128x32xbf16>
    %c0_2 = arith.constant 0 : index
    %c0_3 = arith.constant 0 : index
    %4 = vector.load %arg3[%c0_2, %c0_3] : memref<128x32xbf16, #tpu.memory_space<vmem>>, vector<128x32xbf16>
    %cst = arith.constant dense<0.000000e+00> : vector<128x128xf32>
    %5 = tpu.matmul %3, %4, %cst {dimension_numbers = #tpu.dot_dimension_numbers<[1], [1], [0], [0], [0, 0, 1, 0], [], []>} : vector<128x32xbf16>, vector<128x32xbf16>, vector<128x128xf32> -> vector<128x128xf32>
    %c0_4 = arith.constant 0 : index
    %c0_5 = arith.constant 0 : index
    %6 = vector.load %arg4[%c0_4, %c0_5] : memref<1x128xf32, #tpu.memory_space<vmem>>, vector<1x128xf32>
    %7 = vector.broadcast %6 : vector<1x128xf32> to vector<128x128xf32>
    %8 = arith.addf %5, %7 : vector<128x128xf32>
    %c128_i32 = arith.constant 128 : i32
    %9 = arith.muli %arg0, %c128_i32 : i32
    %10 = tpu.iota {dimensions = array<i32: 0>} : vector<128x128xi32>
    %11 = vector.broadcast %9 : i32 to vector<128x128xi32>
    %12 = arith.addi %11, %10 : vector<128x128xi32>
    %c128_i32_6 = arith.constant 128 : i32
    %13 = arith.muli %arg1, %c128_i32_6 : i32
    %14 = tpu.iota {dimensions = array<i32: 1>} : vector<128x128xi32>
    %15 = vector.broadcast %13 : i32 to vector<128x128xi32>
    %16 = arith.addi %15, %14 : vector<128x128xi32>
    %17 = arith.cmpi eq, %12, %16 : vector<128x128xi32>
    %cst_7 = arith.constant -1.000000e+30 : f32
    %18 = vector.broadcast %cst_7 : f32 to vector<128x128xf32>
    %19 = arith.select %17, %18, %8 : vector<128x128xi1>, vector<128x128xf32>
    %c0_8 = arith.constant 0 : index
    %c0_9 = arith.constant 0 : index
    %20 = vector.load %arg6[%c0_8, %c0_9] : memref<128x1xf32, #tpu.memory_space<vmem>>, vector<128x1xf32>
    %cst_10 = arith.constant dense<0xFF800000> : vector<128xf32>
    %21 = vector.multi_reduction <maximumf>, %19, %cst_10 [1] : vector<128x128xf32> to vector<128xf32>
    %22 = vector.shape_cast %21 : vector<128xf32> to vector<128x1xf32>
    %23 = arith.maximumf %20, %22 : vector<128x1xf32>
    %24 = vector.broadcast %23 : vector<128x1xf32> to vector<128x128xf32>
    %25 = arith.subf %19, %24 : vector<128x128xf32>
    %26 = math.exp %25 : vector<128x128xf32>
    %c0_11 = arith.constant 0 : index
    %c0_12 = arith.constant 0 : index
    %27 = vector.load %arg7[%c0_11, %c0_12] : memref<128x1xf32, #tpu.memory_space<vmem>>, vector<128x1xf32>
    %28 = arith.subf %20, %23 : vector<128x1xf32>
    %29 = math.exp %28 : vector<128x1xf32>
    %30 = arith.mulf %27, %29 : vector<128x1xf32>
    %cst_13 = arith.constant dense<0.000000e+00> : vector<128xf32>
    %31 = vector.multi_reduction <add>, %26, %cst_13 [1] : vector<128x128xf32> to vector<128xf32>
    %32 = vector.shape_cast %31 : vector<128xf32> to vector<128x1xf32>
    %33 = arith.addf %30, %32 : vector<128x1xf32>
    %c0_14 = arith.constant 0 : index
    %c0_15 = arith.constant 0 : index
    %34 = vector.load %arg7[%c0_14, %c0_15] : memref<128x1xf32, #tpu.memory_space<vmem>>, vector<128x1xf32>
    tpu.vector_store %arg7[%c0_14, %c0_15], %33 {strides = array<i32>} : memref<128x1xf32, #tpu.memory_space<vmem>>, vector<128x1xf32>,
    %c0_16 = arith.constant 0 : index
    %c0_17 = arith.constant 0 : index
    %35 = vector.load %arg6[%c0_16, %c0_17] : memref<128x1xf32, #tpu.memory_space<vmem>>, vector<128x1xf32>
    tpu.vector_store %arg6[%c0_16, %c0_17], %23 {strides = array<i32>} : memref<128x1xf32, #tpu.memory_space<vmem>>, vector<128x1xf32>,
    %c0_i32_18 = arith.constant 0 : i32
    %36 = arith.cmpi eq, %arg1, %c0_i32_18 : i32
    %37 = arith.extui %36 : i1 to i32
    %c0_i32_19 = arith.constant 0 : i32
    %38 = arith.cmpi ne, %37, %c0_i32_19 : i32
    scf.if %38 {
      %c0_20 = arith.constant 0 : index
      %c0_21 = arith.constant 0 : index
      %39 = vector.load %arg6[%c0_20, %c0_21] : memref<128x1xf32, #tpu.memory_space<vmem>>, vector<128x1xf32>
      %c0_22 = arith.constant 0 : index
      %c0_23 = arith.constant 0 : index
      %40 = vector.load %arg7[%c0_22, %c0_23] : memref<128x1xf32, #tpu.memory_space<vmem>>, vector<128x1xf32>
      %41 = math.log %40 : vector<128x1xf32>
      %42 = arith.addf %39, %41 : vector<128x1xf32>
      %c0_24 = arith.constant 0 : index
      %c0_25 = arith.constant 0 : index
      %43 = vector.load %arg5[%c0_24, %c0_25] : memref<128x1xf32, #tpu.memory_space<vmem>>, vector<128x1xf32>
      tpu.vector_store %arg5[%c0_24, %c0_25], %42 {strides = array<i32>} : memref<128x1xf32, #tpu.memory_space<vmem>>, vector<128x1xf32>,
    } else {
    }
    return
  }
  func.func @transform_0(%arg0: i32, %arg1: i32) -> (i32, i32) {
    %c0_i32 = arith.constant 0 : i32
    %c0_i32_0 = arith.constant 0 : i32
    return %arg0, %c0_i32 : i32, i32
  }
  func.func @transform_1(%arg0: i32, %arg1: i32) -> (i32, i32) {
    %c0_i32 = arith.constant 0 : i32
    %c0_i32_0 = arith.constant 0 : i32
    return %arg1, %c0_i32 : i32, i32
  }
  func.func @transform_2(%arg0: i32, %arg1: i32) -> (i32, i32) {
    %c0_i32 = arith.constant 0 : i32
    %c0_i32_0 = arith.constant 0 : i32
    return %c0_i32, %arg1 : i32, i32
  }
  func.func @transform_3(%arg0: i32, %arg1: i32) -> (i32, i32) {
    %c0_i32 = arith.constant 0 : i32
    %c0_i32_0 = arith.constant 0 : i32
    return %arg0, %c0_i32 : i32, i32
  }
}

</mosaic_0001>

<bundles_post_ra>
// kernel: tpu_custom_call.1
= control target key start
LH: loop header
LB: loop body
LE: loop exit
PB: predicated region body
PF: predicated region fallthrough
CT: control target
= control target key end

     0   :  { %vm167_vm0 = vcmask 261120   ;;  %v266_v24 = vlaneseq  ;;  %vm18_vm8 = vcmask 7168   ;;  %v1008_v61 = vmov -1e+30   ;;  %s1536_s1 = inlined_call_operand.vmem [shape: bf16[128,32], index: 1, kind: input, shape index: {}]   ;;  %s1537_s2 = inlined_call_operand.vmem [shape: f32[1,128], index: 2, kind: input, shape index: {}]   ;;  %s1538_s0 = inlined_call_operand.vmem [shape: bf16[128,32], index: 0, kind: input, shape index: {}]   ;;  %s1539_s3 = inlined_call_operand.vmem [shape: f32[128,1], index: 3, kind: output, shape index: {}]  }
   0x1   :  { %v880_v0 = vld [vmem:[%s1536_s1 + $0x38] sm:$0xff]  ;;  %v879_v2 = vld [vmem:[%s1536_s1 + $0x30] sm:$0xff]  ;;  %v878_v4 = vld [vmem:[%s1536_s1 + $0x28] sm:$0xff]  ;;  %23 = vst.msk [vmem:[#allocation2 + $0x20] sm:$0xff] %vm18_vm8, %v1008_v61 }
   0x2   :  { %v214_v1 = vsel %vm167_vm0, %v880_v0, 0  ;;  %v211_v3 = vsel %vm167_vm0, %v879_v2, 0  ;;  %v208_v5 = vsel %vm167_vm0, %v878_v4, 0  ;;  %v877_v6 = vld [vmem:[%s1536_s1 + $0x20] sm:$0xff]  ;;  %v876_v8 = vld [vmem:[%s1536_s1 + $0x18] sm:$0xff]  ;;  %v875_v10 = vld [vmem:[%s1536_s1 + $0x10] sm:$0xff] }
   0x3   :  { %216 = vmatpush.bf16.xpose.msra.mxu0 %v214_v1  ;;  %881 = vmatpush.bf16.xpose.msra.mxu1 %v214_v1  ;;  %v205_v7 = vsel %vm167_vm0, %v877_v6, 0  ;;  %v202_v9 = vsel %vm167_vm0, %v876_v8, 0  ;;  %v199_v11 = vsel %vm167_vm0, %v875_v10, 0  ;;  %v874_v12 = vld [vmem:[%s1536_s1 + $0x8] sm:$0xff]  ;;  %v873_v14 = vld [vmem:[%s1536_s1] sm:$0xff]  ;;  %v867_v17 = vld [vmem:[%s1538_s0 + $0x10] sm:$0xff] }
   0x4   :  { %883 = vmatpush.bf16.xpose.msra.mxu3 %v214_v1  ;;  %882 = vmatpush.bf16.xpose.msra.mxu2 %v214_v1  ;;  %v196_v13 = vsel %vm167_vm0, %v874_v12, 0  ;;  %v193_v15 = vsel %vm167_vm0, %v873_v14, 0  ;;  %v865_v16 = vld [vmem:[%s1538_s0] sm:$0xff]  ;;  %v871_v18 = vld [vmem:[%s1538_s0 + $0x30] sm:$0xff]  ;;  %v866_v20 = vld [vmem:[%s1538_s0 + $0x8] sm:$0xff]  ;;  %v1095_v25 = vshrl.u32 %v266_v24, 7 }
   0x5   :  { %v869_v19 = vld [vmem:[%s1538_s0 + $0x20] sm:$0xff]  ;;  %v868_v21 = vld [vmem:[%s1538_s0 + $0x18] sm:$0xff]  ;;  %v870_v22 = vld [vmem:[%s1538_s0 + $0x28] sm:$0xff]  ;;  %v1098_v27 = vand.u32 127, %v266_v24  ;;  %19 = vst.msk [vmem:[#allocation2] sm:$0xff] %vm18_vm8, %v1008_v61 }
   0x6   :  { %v872_v23 = vld [vmem:[%s1538_s0 + $0x38] sm:$0xff]  ;;  %v271_v26 = vadd.s32 32, %v1095_v25  ;;  %v1103_v28 = vld [vmem:[%s1537_s2] ss:$0 sm:$0xff]  ;;  %v275_v35 = vadd.s32 64, %v1095_v25  ;;  %v279_v36 = vadd.s32 96, %v1095_v25 }
   0x7   :  { %vm305_vm2 = vcmp.eq.s32.totalorder %v1095_v25, %v1098_v27  ;;  %v272_v45 = vadd.s32 40, %v1095_v25  ;;  %v280_v46 = vadd.s32 104, %v1095_v25  ;;  %v268_v47 = vadd.s32 8, %v1095_v25  ;;  %20 = vst.msk [vmem:[#allocation2 + $0x8] sm:$0xff] %vm18_vm8, %v1008_v61 }
   0x8   :  { %vm309_vm1 = vcmp.eq.s32.totalorder %v271_v26, %v1098_v27  ;;  %vm313_vm3 = vcmp.eq.s32.totalorder %v275_v35, %v1098_v27  ;;  %vm317_vm4 = vcmp.eq.s32.totalorder %v279_v36, %v1098_v27  ;;  %v269_v55 = vadd.s32 16, %v1095_v25  ;;  %21 = vst.msk [vmem:[#allocation2 + $0x10] sm:$0xff] %vm18_vm8, %v1008_v61 }
   0x9   :  { %vm310_vm5 = vcmp.eq.s32.totalorder %v272_v45, %v1098_v27  ;;  %vm318_vm6 = vcmp.eq.s32.totalorder %v280_v46, %v1098_v27  ;;  %vm306_vm7 = vcmp.eq.s32.totalorder %v268_v47, %v1098_v27  ;;  %v281_v58 = vadd.s32 112, %v1095_v25  ;;  %22 = vst.msk [vmem:[#allocation2 + $0x18] sm:$0xff] %vm18_vm8, %v1008_v61 }
   0xa   :  { %v276_v60 = vadd.s32 72, %v1095_v25  ;;  %vm307_vm9 = vcmp.eq.s32.totalorder %v269_v55, %v1098_v27  ;;  %24 = vst.msk [vmem:[#allocation2 + $0x28] sm:$0xff] %vm18_vm8, %v1008_v61  ;;  %v274_v26 = vadd.s32 56, %v1095_v25 }
   0xb   :  { %217 = vmatpush.bf16.xpose.msra.mxu0 %v211_v3  ;;  %884 = vmatpush.bf16.xpose.msra.mxu1 %v211_v3  ;;  %vm319_vm10 = vcmp.eq.s32.totalorder %v281_v58, %v1098_v27  ;;  %25 = vst.msk [vmem:[#allocation2 + $0x30] sm:$0xff] %vm18_vm8, %v1008_v61 }
   0xc   :  { %886 = vmatpush.bf16.xpose.msra.mxu3 %v211_v3  ;;  %885 = vmatpush.bf16.xpose.msra.mxu2 %v211_v3  ;;  %vm314_vm11 = vcmp.eq.s32.totalorder %v276_v60, %v1098_v27  ;;  %v277_v3 = vadd.s32 80, %v1095_v25  ;;  %26 = vst.msk [vmem:[#allocation2 + $0x38] sm:$0xff] %vm18_vm8, %v1008_v61 }
   0xd   :  { %27 = vst.msk [vmem:[#allocation2 + $0x40] sm:$0xff] %vm18_vm8, %v1008_v61 }
   0xe   :  { %vm315_vm12 = vcmp.eq.s32.totalorder %v277_v3, %v1098_v27  ;;  %28 = vst.msk [vmem:[#allocation2 + $0x48] sm:$0xff] %vm18_vm8, %v1008_v61 }
   0xf   :  { %29 = vst.msk [vmem:[#allocation2 + $0x50] sm:$0xff] %vm18_vm8, %v1008_v61 }
  0x10   :  { %30 = vst.msk [vmem:[#allocation2 + $0x58] sm:$0xff] %vm18_vm8, %v1008_v61 }
  0x11   :  { %31 = vst.msk [vmem:[#allocation2 + $0x60] sm:$0xff] %vm18_vm8, %v1008_v61 }
  0x12   :  { %32 = vst.msk [vmem:[#allocation2 + $0x68] sm:$0xff] %vm18_vm8, %v1008_v61 }
  0x13   :  { %218 = vmatpush.bf16.xpose.msra.mxu0 %v208_v5  ;;  %887 = vmatpush.bf16.xpose.msra.mxu1 %v208_v5  ;;  %33 = vst.msk [vmem:[#allocation2 + $0x70] sm:$0xff] %vm18_vm8, %v1008_v61 }
  0x14   :  { %889 = vmatpush.bf16.xpose.msra.mxu3 %v208_v5  ;;  %888 = vmatpush.bf16.xpose.msra.mxu2 %v208_v5  ;;  %v273_v5 = vadd.s32 48, %v1095_v25  ;;  %34 = vst.msk [vmem:[#allocation2 + $0x78] sm:$0xff] %vm18_vm8, %v1008_v61 }
  0x15   :  { %v1302_v3 = vld [vmem:[#allocation2 + $0x48] sm:$0xff] }
  0x16   :  { %vm311_vm13 = vcmp.eq.s32.totalorder %v273_v5, %v1098_v27 }
  0x1a   :  { %v1304_v5 = vld [vmem:[#allocation2 + $0x70] sm:$0xff] }
  0x1b   :  { %219 = vmatpush.bf16.xpose.msra.mxu0 %v205_v7  ;;  %890 = vmatpush.bf16.xpose.msra.mxu1 %v205_v7 }
  0x1c   :  { %892 = vmatpush.bf16.xpose.msra.mxu3 %v205_v7  ;;  %891 = vmatpush.bf16.xpose.msra.mxu2 %v205_v7  ;;  %v278_v7 = vadd.s32 88, %v1095_v25 }
  0x1e   :  { %vm316_vm14 = vcmp.eq.s32.totalorder %v278_v7, %v1098_v27 }
  0x23   :  { %220 = vmatpush.bf16.xpose.msra.mxu0 %v202_v9  ;;  %893 = vmatpush.bf16.xpose.msra.mxu1 %v202_v9 }
  0x24   :  { %895 = vmatpush.bf16.xpose.msra.mxu3 %v202_v9  ;;  %894 = vmatpush.bf16.xpose.msra.mxu2 %v202_v9 }
  0x2b   :  { %221 = vmatpush.bf16.xpose.msra.mxu0 %v199_v11  ;;  %896 = vmatpush.bf16.xpose.msra.mxu1 %v199_v11 }
  0x2c   :  { %898 = vmatpush.bf16.xpose.msra.mxu3 %v199_v11  ;;  %897 = vmatpush.bf16.xpose.msra.mxu2 %v199_v11 }
  0x33   :  { %222 = vmatpush.bf16.xpose.msra.mxu0 %v196_v13  ;;  %899 = vmatpush.bf16.xpose.msra.mxu1 %v196_v13 }
  0x34   :  { %901 = vmatpush.bf16.xpose.msra.mxu3 %v196_v13  ;;  %900 = vmatpush.bf16.xpose.msra.mxu2 %v196_v13 }
  0x3b   :  { %223 = vmatpush.bf16.xpose.msra.mxu0 %v193_v15  ;;  %902 = vmatpush.bf16.xpose.msra.mxu1 %v193_v15 }
  0x3c   :  { %904 = vmatpush.bf16.xpose.msra.mxu3 %v193_v15  ;;  %903 = vmatpush.bf16.xpose.msra.mxu2 %v193_v15 }
  0x42   :  { %857 = vmatmul.msk.bf16.vlgmr.msra.gmra.mxu0 %vm167_vm0, %v865_v16  ;;  %859 = vmatmul.msk.bf16.vlgmr.msra.gmra.mxu1 %vm167_vm0, %v867_v17  ;;  %v270_v16 = vadd.s32 24, %v1095_v25 }
  0x43   :  { %863 = vmatmul.msk.bf16.vlgmr.msra.gmra.mxu3 %vm167_vm0, %v871_v18  ;;  %861 = vmatmul.msk.bf16.vlgmr.msra.gmra.mxu2 %vm167_vm0, %v869_v19  ;;  %v282_v19 = vadd.s32 120, %v1095_v25  ;;  %v1232_v25 = vld [vmem:[#allocation2 + $0x20] sm:$0xff] }
  0x44   :  { %vm308_vm15 = vcmp.eq.s32.totalorder %v270_v16, %v1098_v27 }
  0x52   :  { %858 = vmatmul.msk.bf16.gmra.mxu0 %vm167_vm0, %v866_v20  ;;  %860 = vmatmul.msk.bf16.gmra.mxu1 %vm167_vm0, %v868_v21 }
  0x53   :  { %862 = vmatmul.msk.bf16.gmra.mxu2 %vm167_vm0, %v870_v22  ;;  %864 = vmatmul.msk.bf16.gmra.mxu3 %vm167_vm0, %v872_v23  ;;  %vm320_vm0 = vcmp.eq.s32.totalorder %v282_v19, %v1098_v27  ;;  %v1329_v19 = vld [vmem:[#allocation2 + $0x50] sm:$0xff] }
  0xbf   :  { %v225_v29 = vpop.f32.mrf.mxu0  ;;  %v235_v30 = vpop.f32.mrf.mxu1 }
  0xc0   :  { %v226_v31 = vadd.f32 %v1103_v28, %v225_v29  ;;  %v236_v32 = vadd.f32 %v1103_v28, %v235_v30 }
  0xc2   :  { %v1110_v33 = vsel %vm309_vm1, -1e+30, %v236_v32  ;;  %v1112_v34 = vsel %vm305_vm2, -1e+30, %v226_v31  ;;  %vm312_vm1 = vcmp.eq.s32.totalorder %v274_v26, %v1098_v27  ;;  %v1009_v31 = vmov 0   ;;  %v1234_v27 = vld [vmem:[#allocation2] sm:$0xff] }
  0xc3   :  { %361 = vmax.xlane.f32.xlu2 %v1110_v33  ;;  %353 = vmax.xlane.f32.xlu0 %v1112_v34  ;;  %v1010_v32 = vmov 0.0  }
  0xc4   :  { %908 = vset.pattern.permute.xlu1 %v1009_v31  ;;  %909 = vset.pattern.permute.xlu0 %v1009_v31  ;;  %35 = vst.msk [vmem:[#allocation3] sm:$0xff] %vm18_vm8, %v1010_v32 }
  0xc5   :  { %910 = vset.pattern.permute.xlu2 %v1009_v31  ;;  %36 = vst.msk [vmem:[#allocation3 + $0x8] sm:$0xff] %vm18_vm8, %v1010_v32 }
  0xc6   :  { %v255_v37 = vpop.f32.mrf.mxu3  ;;  %v245_v38 = vpop.f32.mrf.mxu2  ;;  %37 = vst.msk [vmem:[#allocation3 + $0x10] sm:$0xff] %vm18_vm8, %v1010_v32 }
  0xc7   :  { %v256_v39 = vadd.f32 %v1103_v28, %v255_v37  ;;  %v246_v40 = vadd.f32 %v1103_v28, %v245_v38  ;;  %v227_v41 = vpop.f32.mrf.mxu0  ;;  %v237_v44 = vpop.f32.mrf.mxu1  ;;  %38 = vst.msk [vmem:[#allocation3 + $0x18] sm:$0xff] %vm18_vm8, %v1010_v32 }
  0xc8   :  { %v238_v48 = vadd.f32 %v1103_v28, %v237_v44  ;;  %v228_v49 = vadd.f32 %v1103_v28, %v227_v41  ;;  %39 = vst.msk [vmem:[#allocation3 + $0x20] sm:$0xff] %vm18_vm8, %v1010_v32  ;;  %v1253_v41 = vld [vmem:[#allocation2 + $0x60] sm:$0xff] }
  0xc9   :  { %v1122_v42 = vsel %vm313_vm3, -1e+30, %v246_v40  ;;  %v1124_v43 = vsel %vm317_vm4, -1e+30, %v256_v39  ;;  %40 = vst.msk [vmem:[#allocation3 + $0x28] sm:$0xff] %vm18_vm8, %v1010_v32  ;;  %v1251_v40 = vld [vmem:[#allocation2 + $0x40] sm:$0xff] }
  0xca   :  { %v1137_v53 = vsel %vm310_vm5, -1e+30, %v238_v48  ;;  %v1143_v57 = vsel %vm306_vm7, -1e+30, %v228_v49  ;;  %41 = vst.msk [vmem:[#allocation3 + $0x30] sm:$0xff] %vm18_vm8, %v1010_v32 }
  0xcb   :  { %369 = vmax.xlane.f32.xlu2 %v1122_v42  ;;  %377 = vmax.xlane.f32.xlu0 %v1124_v43  ;;  %42 = vst.msk [vmem:[#allocation3 + $0x38] sm:$0xff] %vm18_vm8, %v1010_v32 }
  0xcc   :  { %43 = vst.msk [vmem:[#allocation3 + $0x40] sm:$0xff] %vm18_vm8, %v1010_v32 }
  0xcd   :  { %44 = vst.msk [vmem:[#allocation3 + $0x48] sm:$0xff] %vm18_vm8, %v1010_v32 }
  0xce   :  { %v257_v50 = vpop.f32.mrf.mxu3  ;;  %v247_v51 = vpop.f32.mrf.mxu2  ;;  %45 = vst.msk [vmem:[#allocation3 + $0x50] sm:$0xff] %vm18_vm8, %v1010_v32 }
  0xcf   :  { %v258_v52 = vadd.f32 %v1103_v28, %v257_v50  ;;  %v230_v54 = vpop.f32.mrf.mxu0  ;;  %v248_v62 = vadd.f32 %v1103_v28, %v247_v51  ;;  %v240_v8 = vpop.f32.mrf.mxu1  ;;  %46 = vst.msk [vmem:[#allocation3 + $0x58] sm:$0xff] %vm18_vm8, %v1010_v32  ;;  %v1271_v50 = vld [vmem:[#allocation2 + $0x68] sm:$0xff] }
  0xd0   :  { %v231_v59 = vadd.f32 %v1103_v28, %v230_v54  ;;  %v241_v10 = vadd.f32 %v1103_v28, %v240_v8  ;;  %47 = vst.msk [vmem:[#allocation3 + $0x60] sm:$0xff] %vm18_vm8, %v1010_v32  ;;  %v1273_v51 = vld [vmem:[#allocation2 + $0x28] sm:$0xff] }
  0xd1   :  { %v1140_v56 = vsel %vm318_vm6, -1e+30, %v258_v52  ;;  %v1168_v6 = vsel %vm314_vm11, -1e+30, %v248_v62  ;;  %48 = vst.msk [vmem:[#allocation3 + $0x68] sm:$0xff] %vm18_vm8, %v1010_v32  ;;  %v1275_v52 = vld [vmem:[#allocation2 + $0x8] sm:$0xff] }
  0xd2   :  { %379 = vmax.xlane.f32.xlu1 %v1140_v56  ;;  %v1156_v1 = vsel %vm307_vm9, -1e+30, %v231_v59  ;;  %v1187_v14 = vsel %vm311_vm13, -1e+30, %v241_v10  ;;  %49 = vst.msk [vmem:[#allocation3 + $0x70] sm:$0xff] %vm18_vm8, %v1010_v32 }
  0xd3   :  { %363 = vmax.xlane.f32.xlu2 %v1137_v53  ;;  %355 = vmax.xlane.f32.xlu0 %v1143_v57  ;;  %50 = vst.msk [vmem:[#allocation3 + $0x78] sm:$0xff] %vm18_vm8, %v1010_v32 }
  0xd6   :  { %v250_v63 = vpop.f32.mrf.mxu2  ;;  %v260_v0 = vpop.f32.mrf.mxu3 }
  0xd7   :  { %v261_v2 = vadd.f32 %v1103_v28, %v260_v0  ;;  %v251_v9 = vadd.f32 %v1103_v28, %v250_v63  ;;  %v232_v15 = vpop.f32.mrf.mxu0  ;;  %v242_v24 = vpop.f32.mrf.mxu1 }
  0xd8   :  { %v233_v20 = vadd.f32 %v1103_v28, %v232_v15  ;;  %v243_v29 = vadd.f32 %v1103_v28, %v242_v24 }
  0xd9   :  { %v1163_v4 = vsel %vm319_vm10, -1e+30, %v261_v2  ;;  %v1183_v12 = vsel %vm315_vm12, -1e+30, %v251_v9  ;;  %v1300_v2 = vld [vmem:[#allocation2 + $0x10] sm:$0xff] }
  0xda   :  { %357 = vmax.xlane.f32.xlu1 %v1156_v1  ;;  %v1204_v22 = vsel %vm308_vm15, -1e+30, %v233_v20  ;;  %v1213_v30 = vsel %vm312_vm1, -1e+30, %v243_v29  ;;  %v1331_v20 = vld [vmem:[#allocation2 + $0x30] sm:$0xff] }
  0xdb   :  { %371 = vmax.xlane.f32.xlu0 %v1168_v6  ;;  %381 = vmax.xlane.f32.xlu2 %v1163_v4 }
  0xde   :  { %v252_v11 = vpop.f32.mrf.mxu2  ;;  %v262_v17 = vpop.f32.mrf.mxu3 }
  0xdf   :  { %v253_v13 = vadd.f32 %v1103_v28, %v252_v11  ;;  %v263_v21 = vadd.f32 %v1103_v28, %v262_v17 }
  0xe1   :  { %v1191_v18 = vsel %vm316_vm14, -1e+30, %v253_v13  ;;  %v1206_v23 = vsel %vm320_vm0, -1e+30, %v263_v21  ;;  %v1333_v21 = vld [vmem:[#allocation2 + $0x58] sm:$0xff] }
  0xe2   :  { %373 = vmax.xlane.f32.xlu1 %v1183_v12 }
  0xe3   :  { %365 = vmax.xlane.f32.xlu0 %v1187_v14  ;;  %375 = vmax.xlane.f32.xlu2 %v1191_v18 }
  0xea   :  { %359 = vmax.xlane.f32.xlu1 %v1204_v22 }
  0xeb   :  { %383 = vmax.xlane.f32.xlu0 %v1206_v23 }
  0xf2   :  { %367 = vmax.xlane.f32.xlu1 %v1213_v30 }
 0x136   :  { %v362_v28 = vpop.xlane.xlu2 %361  ;;  %v354_v35 = vpop.xlane.xlu0 %353 }
 0x137   :  { %v1237_v36 = vmax.f32 %v1232_v25, %v362_v28  ;;  %v1240_v37 = vmax.f32 %v1234_v27, %v354_v35 }
 0x139   :  { %678 = vst.msk [vmem:[#allocation2 + $0x20] sm:$0xff] %vm18_vm8, %v1237_v36  ;;  %403 = vperm.xlu1 %908, %v1240_v37  }
 0x13a   :  { %674 = vst.msk [vmem:[#allocation2] sm:$0xff] %vm18_vm8, %v1240_v37 }
 0x13e   :  { %v370_v44 = vpop.xlane.xlu2 %369  ;;  %v378_v45 = vpop.xlane.xlu0 %377 }
 0x13f   :  { %v1256_v46 = vmax.f32 %v1251_v40, %v370_v44  ;;  %v1259_v47 = vmax.f32 %v1253_v41, %v378_v45 }
 0x141   :  { %682 = vst.msk [vmem:[#allocation2 + $0x40] sm:$0xff] %vm18_vm8, %v1256_v46  ;;  %423 = vperm.xlu1 %908, %v1237_v36   ;;  %463 = vperm.xlu0 %909, %v1259_v47  }
 0x142   :  { %686 = vst.msk [vmem:[#allocation2 + $0x60] sm:$0xff] %vm18_vm8, %v1259_v47 }
 0x145   :  { %v380_v54 = vpop.xlane.xlu1 %379 }
 0x146   :  { %v1278_v55 = vmax.f32 %v1271_v50, %v380_v54  ;;  %v364_v58 = vpop.xlane.xlu2 %363  ;;  %v356_v59 = vpop.xlane.xlu0 %355  ;;  %v1359_v54 = vld [vmem:[#allocation2 + $0x18] sm:$0xff] }
 0x147   :  { %v1281_v60 = vmax.f32 %v1273_v51, %v364_v58  ;;  %v1284_v61 = vmax.f32 %v1275_v52, %v356_v59  ;;  %v1361_v58 = vld [vmem:[#allocation2 + $0x78] sm:$0xff] }
 0x148   :  { %687 = vst.msk [vmem:[#allocation2 + $0x68] sm:$0xff] %vm18_vm8, %v1278_v55 }
 0x149   :  { %679 = vst.msk [vmem:[#allocation2 + $0x28] sm:$0xff] %vm18_vm8, %v1281_v60  ;;  %443 = vperm.xlu1 %908, %v1256_v46   ;;  %408 = vperm.xlu2 %910, %v1284_v61  }
 0x14a   :  { %675 = vst.msk [vmem:[#allocation2 + $0x8] sm:$0xff] %vm18_vm8, %v1284_v61 }
 0x14d   :  { %v358_v7 = vpop.xlane.xlu1 %357 }
 0x14e   :  { %v1307_v8 = vmax.f32 %v1300_v2, %v358_v7  ;;  %v372_v9 = vpop.xlane.xlu0 %371  ;;  %v382_v10 = vpop.xlane.xlu2 %381 }
 0x14f   :  { %v1310_v11 = vmax.f32 %v1302_v3, %v372_v9  ;;  %v1313_v13 = vmax.f32 %v1304_v5, %v382_v10 }
 0x150   :  { %676 = vst.msk [vmem:[#allocation2 + $0x10] sm:$0xff] %vm18_vm8, %v1307_v8 }
 0x151   :  { %683 = vst.msk [vmem:[#allocation2 + $0x48] sm:$0xff] %vm18_vm8, %v1310_v11  ;;  %428 = vperm.xlu2 %910, %v1281_v60   ;;  %448 = vperm.xlu0 %909, %v1310_v11  }
 0x152   :  { %688 = vst.msk [vmem:[#allocation2 + $0x70] sm:$0xff] %vm18_vm8, %v1313_v13 }
 0x155   :  { %v374_v24 = vpop.xlane.xlu1 %373 }
 0x156   :  { %v1336_v26 = vmax.f32 %v1329_v19, %v374_v24  ;;  %v366_v29 = vpop.xlane.xlu0 %365  ;;  %v376_v31 = vpop.xlane.xlu2 %375 }
 0x157   :  { %v1339_v32 = vmax.f32 %v1331_v20, %v366_v29  ;;  %v1342_v28 = vmax.f32 %v1333_v21, %v376_v31  ;;  %v1380_v31 = vld [vmem:[#allocation2 + $0x38] sm:$0xff] }
 0x158   :  { %684 = vst.msk [vmem:[#allocation2 + $0x50] sm:$0xff] %vm18_vm8, %v1336_v26 }
 0x159   :  { %680 = vst.msk [vmem:[#allocation2 + $0x30] sm:$0xff] %vm18_vm8, %v1339_v32  ;;  %468 = vperm.xlu2 %910, %v1278_v55   ;;  %413 = vperm.xlu0 %909, %v1307_v8  }
 0x15a   :  { %433 = vperm.xlu1 %908, %v1339_v32   ;;  %685 = vst.msk [vmem:[#allocation2 + $0x58] sm:$0xff] %vm18_vm8, %v1342_v28 }
 0x15d   :  { %v360_v59 = vpop.xlane.xlu1 %359 }
 0x15e   :  { %v1364_v7 = vmax.f32 %v1359_v54, %v360_v59  ;;  %v384_v9 = vpop.xlane.xlu0 %383 }
 0x15f   :  { %v1367_v10 = vmax.f32 %v1361_v58, %v384_v9 }
 0x160   :  { %677 = vst.msk [vmem:[#allocation2 + $0x18] sm:$0xff] %vm18_vm8, %v1364_v7 }
 0x161   :  { %689 = vst.msk [vmem:[#allocation2 + $0x78] sm:$0xff] %vm18_vm8, %v1367_v10  ;;  %453 = vperm.xlu2 %910, %v1336_v26   ;;  %478 = vperm.xlu0 %909, %v1367_v10  }
 0x162   :  { %473 = vperm.xlu1 %908, %v1313_v13  }
 0x165   :  { %v368_v59 = vpop.xlane.xlu1 %367 }
 0x166   :  { %v1383_v9 = vmax.f32 %v1380_v31, %v368_v59 }
 0x168   :  { %681 = vst.msk [vmem:[#allocation2 + $0x38] sm:$0xff] %vm18_vm8, %v1383_v9 }
 0x169   :  { %418 = vperm.xlu2 %910, %v1364_v7  }
 0x16a   :  { %458 = vperm.xlu1 %908, %v1342_v28  }
 0x171   :  { %438 = vperm.xlu2 %910, %v1383_v9  }
 0x1a3   :  { %v409_v29 = vpop.permute.xlu2 %408 }
 0x1a4   :  { %v482_v48 = vsub.f32 %v1143_v57, %v409_v29 }
 0x1a6   :  { %v499_v38 = vmul.f32 1.442695, %v482_v48 }
 0x1ab   :  { %v404_v45 = vpop.permute.xlu1 %403  ;;  %v429_v44 = vpop.permute.xlu2 %428 }
 0x1ac   :  { %v481_v62 = vsub.f32 %v1112_v34, %v404_v45 }
 0x1ae   :  { %v497_v15 = vmul.f32 1.442695, %v481_v62 }
 0x1b0   :  { %912 = vpow2.f32 %v497_v15 }
 0x1b3   :  { %v424_v59 = vpop.permute.xlu1 %423  ;;  %v469_v24 = vpop.permute.xlu2 %468 }
 0x1b4   :  { %v485_v17 = vsub.f32 %v1110_v33, %v424_v59  ;;  %v464_v16 = vpop.permute.xlu0 %463  ;;  %v486_v33 = vsub.f32 %v1137_v53, %v429_v44 }
 0x1b5   :  { %v493_v35 = vsub.f32 %v1124_v43, %v464_v16 }
 0x1b6   :  { %v913_v63 = vpop.eup %912  ;;  %v505_v0 = vmul.f32 1.442695, %v485_v17  ;;  %v507_v57 = vmul.f32 1.442695, %v486_v33 }
 0x1b7   :  { %v521_v49 = vmul.f32 1.442695, %v493_v35  ;;  %609 = vadd.xlane.f32.xlu2 %v913_v63 }
 0x1b8   :  { %914 = vpow2.f32 %v505_v0 }
 0x1b9   :  { %916 = vpow2.f32 %v521_v49 }
 0x1ba   :  { %918 = vpow2.f32 %v499_v38 }
 0x1bb   :  { %v444_v39 = vpop.permute.xlu1 %443  ;;  %v454_v34 = vpop.permute.xlu2 %453 }
 0x1bc   :  { %v489_v62 = vsub.f32 %v1122_v42, %v444_v39  ;;  %v491_v16 = vsub.f32 %v1183_v12, %v454_v34 }
 0x1be   :  { %v915_v15 = vpop.eup %914  ;;  %v513_v45 = vmul.f32 1.442695, %v489_v62  ;;  %v517_v49 = vmul.f32 1.442695, %v491_v16 }
 0x1bf   :  { %617 = vadd.xlane.f32.xlu1 %v915_v15  ;;  %v917_v43 = vpop.eup %916 }
 0x1c0   :  { %920 = vpow2.f32 %v513_v45  ;;  %633 = vadd.xlane.f32.xlu0 %v917_v43  ;;  %v919_v17 = vpop.eup %918 }
 0x1c1   :  { %922 = vpow2.f32 %v507_v57 }
 0x1c2   :  { %924 = vpow2.f32 %v517_v49 }
 0x1c3   :  { %v419_v63 = vpop.permute.xlu2 %418  ;;  %v449_v0 = vpop.permute.xlu0 %448 }
 0x1c4   :  { %v490_v48 = vsub.f32 %v1168_v6, %v449_v0  ;;  %v484_v38 = vsub.f32 %v1204_v22, %v419_v63  ;;  %v494_v22 = vsub.f32 %v1140_v56, %v469_v24 }
 0x1c6   :  { %v921_v35 = vpop.eup %920  ;;  %v515_v42 = vmul.f32 1.442695, %v490_v48  ;;  %v503_v53 = vmul.f32 1.442695, %v484_v38  ;;  %v523_v43 = vmul.f32 1.442695, %v494_v22  ;;  %v1544_v22 = vsub.f32 %v1275_v52, %v1284_v61 }
 0x1c7   :  { %625 = vadd.xlane.f32.xlu2 %v921_v35  ;;  %611 = vadd.xlane.f32.xlu1 %v919_v17  ;;  %v923_v34 = vpop.eup %922  ;;  %v1546_v52 = vsub.f32 %v1329_v19, %v1336_v26 }
 0x1c8   :  { %926 = vpow2.f32 %v515_v42  ;;  %v925_v6 = vpop.eup %924 }
 0x1c9   :  { %928 = vpow2.f32 %v503_v53  ;;  %v581_v61 = vmul.f32 1.442695, %v1546_v52 }
 0x1cb   :  { %v439_v39 = vpop.permute.xlu2 %438  ;;  %v414_v12 = vpop.permute.xlu0 %413 }
 0x1cc   :  { %v488_v44 = vsub.f32 %v1213_v30, %v439_v39  ;;  %v434_v29 = vpop.permute.xlu1 %433  ;;  %v483_v59 = vsub.f32 %v1156_v1, %v414_v12 }
 0x1cd   :  { %v487_v33 = vsub.f32 %v1187_v14, %v434_v29 }
 0x1ce   :  { %v511_v62 = vmul.f32 1.442695, %v488_v44  ;;  %v501_v15 = vmul.f32 1.442695, %v483_v59  ;;  %v927_v45 = vpop.eup %926  ;;  %v1541_v44 = vsub.f32 %v1232_v25, %v1237_v36  ;;  %v1542_v59 = vsub.f32 %v1253_v41, %v1259_v47  ;;  %v541_v47 = vld [vmem:[#allocation3 + $0x60] sm:$0xff] }
 0x1cf   :  { %619 = vadd.xlane.f32.xlu2 %v923_v34  ;;  %629 = vadd.xlane.f32.xlu1 %v925_v6  ;;  %v929_v16 = vpop.eup %928  ;;  %v509_v1 = vmul.f32 1.442695, %v487_v33  ;;  %v529_v6 = vld [vmem:[#allocation3] sm:$0xff]  ;;  %v563_v25 = vmul.f32 1.442695, %v1544_v22 }
 0x1d0   :  { %930 = vpow2.f32 %v511_v62  ;;  %627 = vadd.xlane.f32.xlu0 %v927_v45  ;;  %v585_v34 = vmul.f32 1.442695, %v1542_v59  ;;  %v1543_v45 = vsub.f32 %v1251_v40, %v1256_v46  ;;  %v533_v33 = vld [vmem:[#allocation3 + $0x20] sm:$0xff] }
 0x1d1   :  { %932 = vpow2.f32 %v501_v15 }
 0x1d2   :  { %934 = vpow2.f32 %v523_v43 }
 0x1d3   :  { %v479_v63 = vpop.permute.xlu0 %478  ;;  %936 = vpow2.f32 %v509_v1 }
 0x1d4   :  { %v474_v30 = vpop.permute.xlu1 %473  ;;  %v496_v49 = vsub.f32 %v1206_v23, %v479_v63 }
 0x1d5   :  { %v495_v42 = vsub.f32 %v1163_v4, %v474_v30  ;;  %v569_v4 = vmul.f32 1.442695, %v1541_v44  ;;  %v693_v44 = vld [vmem:[#allocation2] sm:$0xff] }
 0x1d6   :  { %v931_v57 = vpop.eup %930  ;;  %v527_v14 = vmul.f32 1.442695, %v496_v49  ;;  %v1547_v49 = vsub.f32 %v1302_v3, %v1310_v11 }
 0x1d7   :  { %615 = vadd.xlane.f32.xlu2 %v929_v16  ;;  %623 = vadd.xlane.f32.xlu1 %v931_v57  ;;  %v933_v0 = vpop.eup %932  ;;  %v525_v38 = vmul.f32 1.442695, %v495_v42  ;;  %v1545_v16 = vsub.f32 %v1273_v51, %v1281_v60  ;;  %v537_v51 = vld [vmem:[#allocation3 + $0x40] sm:$0xff]  ;;  %v530_v60 = vld [vmem:[#allocation3 + $0x8] sm:$0xff] }
 0x1d8   :  { %613 = vadd.xlane.f32.xlu0 %v933_v0  ;;  %v935_v48 = vpop.eup %934 }
 0x1d9   :  { %v937_v35 = vpop.eup %936  ;;  %v571_v40 = vmul.f32 1.442695, %v1545_v16 }
 0x1dc   :  { %v459_v56 = vpop.permute.xlu1 %458 }
 0x1dd   :  { %v492_v24 = vsub.f32 %v1191_v18, %v459_v56  ;;  %v1540_v18 = vsub.f32 %v1234_v27, %v1240_v37  ;;  %v577_v27 = vmul.f32 1.442695, %v1543_v45  ;;  %v579_v56 = vmul.f32 1.442695, %v1547_v49 }
 0x1df   :  { %v519_v17 = vmul.f32 1.442695, %v492_v24  ;;  %635 = vadd.xlane.f32.xlu1 %v935_v48  ;;  %v561_v12 = vmul.f32 1.442695, %v1540_v18 }
 0x1e0   :  { %621 = vadd.xlane.f32.xlu0 %v937_v35 }
 0x1e1   :  { %938 = vpow2.f32 %v519_v17 }
 0x1e2   :  { %940 = vpow2.f32 %v527_v14  ;;  %v1548_v14 = vsub.f32 %v1359_v54, %v1364_v7  ;;  %v1550_v54 = vsub.f32 %v1300_v2, %v1307_v8 }
 0x1e3   :  { %942 = vpow2.f32 %v525_v38 }
 0x1e4   :  { %944 = vpow2.f32 %v561_v12  ;;  %v567_v17 = vmul.f32 1.442695, %v1548_v14  ;;  %v565_v7 = vmul.f32 1.442695, %v1550_v54 }
 0x1e5   :  { %946 = vpow2.f32 %v569_v4 }
 0x1e6   :  { %948 = vpow2.f32 %v585_v34  ;;  %v534_v34 = vld [vmem:[#allocation3 + $0x28] sm:$0xff] }
 0x1e7   :  { %v939_v53 = vpop.eup %938  ;;  %950 = vpow2.f32 %v577_v27 }
 0x1e8   :  { %v941_v39 = vpop.eup %940  ;;  %631 = vadd.xlane.f32.xlu2 %v939_v53  ;;  %952 = vpow2.f32 %v563_v25  ;;  %v1549_v53 = vsub.f32 %v1380_v31, %v1383_v9  ;;  %v539_v31 = vld [vmem:[#allocation3 + $0x50] sm:$0xff] }
 0x1e9   :  { %639 = vadd.xlane.f32.xlu0 %v941_v39  ;;  %v943_v23 = vpop.eup %942 }
 0x1ea   :  { %v945_v29 = vpop.eup %944  ;;  %v575_v39 = vmul.f32 1.442695, %v1549_v53 }
 0x1eb   :  { %v593_v62 = vmul.f32 %v945_v29, %v529_v6  ;;  %v947_v36 = vpop.eup %946  ;;  %v538_v6 = vld [vmem:[#allocation3 + $0x48] sm:$0xff] }
 0x1ec   :  { %v949_v41 = vpop.eup %948  ;;  %v597_v43 = vmul.f32 %v947_v36, %v533_v33  ;;  %v1551_v33 = vsub.f32 %v1271_v50, %v1278_v55  ;;  %v536_v50 = vld [vmem:[#allocation3 + $0x38] sm:$0xff]  ;;  %v705_v55 = vld [vmem:[#allocation2 + $0x60] sm:$0xff] }
 0x1ed   :  { %v605_v57 = vmul.f32 %v949_v41, %v541_v47  ;;  %v951_v0 = vpop.eup %950 }
 0x1ee   :  { %v953_v48 = vpop.eup %952  ;;  %v601_v19 = vmul.f32 %v951_v0, %v537_v51  ;;  %v587_v41 = vmul.f32 1.442695, %v1551_v33 }
 0x1ef   :  { %v594_v26 = vmul.f32 %v953_v48, %v530_v60 }
 0x1f0   :  { %637 = vadd.xlane.f32.xlu2 %v943_v23 }
 0x22a   :  { %v610_v15 = vpop.xlane.xlu2 %609 }
 0x22b   :  { %v641_v37 = vadd.f32 %v610_v15, %v593_v62 }
 0x22d   :  { %658 = vst.msk [vmem:[#allocation3] sm:$0xff] %vm18_vm8, %v641_v37 }
 0x232   :  { %v618_v30 = vpop.xlane.xlu1 %617 }
 0x233   :  { %v645_v46 = vadd.f32 %v618_v30, %v597_v43  ;;  %v634_v63 = vpop.xlane.xlu0 %633 }
 0x234   :  { %v709_v1 = vld [vmem:[#allocation3] sm:$0xff]  ;;  %v653_v24 = vadd.f32 %v634_v63, %v605_v57  ;;  %v532_v57 = vld [vmem:[#allocation3 + $0x18] sm:$0xff] }
 0x235   :  { %954 = vlog2.f32 %v709_v1  ;;  %662 = vst.msk [vmem:[#allocation3 + $0x20] sm:$0xff] %vm18_vm8, %v645_v46 }
 0x236   :  { %956 = vpow2.f32 %v571_v40  ;;  %670 = vst.msk [vmem:[#allocation3 + $0x60] sm:$0xff] %vm18_vm8, %v653_v24  ;;  %v697_v40 = vld [vmem:[#allocation2 + $0x20] sm:$0xff]  ;;  %v531_v24 = vld [vmem:[#allocation3 + $0x10] sm:$0xff] }
 0x237   :  { %958 = vpow2.f32 %v581_v61  ;;  %v1552_v61 = vsub.f32 %v1331_v20, %v1339_v32 }
 0x238   :  { %960 = vpow2.f32 %v579_v56 }
 0x239   :  { %v573_v1 = vmul.f32 1.442695, %v1552_v61 }
 0x23a   :  { %v626_v3 = vpop.xlane.xlu2 %625  ;;  %v612_v11 = vpop.xlane.xlu1 %611 }
 0x23b   :  { %v955_v35 = vpop.eup %954  ;;  %v649_v42 = vadd.f32 %v626_v3, %v601_v19  ;;  %v642_v38 = vadd.f32 %v612_v11, %v594_v26  ;;  %v701_v3 = vld [vmem:[#allocation2 + $0x40] sm:$0xff] }
 0x23c   :  { %v726_v23 = vmul.f32 0.6931472, %v955_v35  ;;  %v713_v18 = vld [vmem:[#allocation3 + $0x20] sm:$0xff]  ;;  %v957_v12 = vpop.eup %956 }
 0x23d   :  { %962 = vlog2.f32 %v713_v18  ;;  %666 = vst.msk [vmem:[#allocation3 + $0x40] sm:$0xff] %vm18_vm8, %v649_v42  ;;  %v959_v4 = vpop.eup %958  ;;  %v721_v59 = vld [vmem:[#allocation3 + $0x60] sm:$0xff]  ;;  %v598_v62 = vmul.f32 %v957_v12, %v534_v34  ;;  %v535_v34 = vld [vmem:[#allocation3 + $0x30] sm:$0xff] }
 0x23e   :  { %964 = vpow2.f32 %v567_v17  ;;  %v757_v29 = vadd.f32 %v726_v23, %v693_v44  ;;  %659 = vst.msk [vmem:[#allocation3 + $0x8] sm:$0xff] %vm18_vm8, %v642_v38  ;;  %v961_v9 = vpop.eup %960  ;;  %v603_v15 = vmul.f32 %v959_v4, %v539_v31  ;;  %v1553_v38 = vsub.f32 %v1333_v21, %v1342_v28  ;;  %v694_v44 = vld [vmem:[#allocation2 + $0x8] sm:$0xff] }
 0x23f   :  { %966 = vlog2.f32 %v721_v59  ;;  %v602_v45 = vmul.f32 %v961_v9, %v538_v6  ;;  %v1554_v4 = vsub.f32 %v1361_v58, %v1367_v10  ;;  %v542_v59 = vld [vmem:[#allocation3 + $0x68] sm:$0xff] }
 0x240   :  { %968 = vpow2.f32 %v575_v39  ;;  %773 = vst.msk [vmem:[%s1539_s3] sm:$0xff] %vm18_vm8, %v757_v29  ;;  %v583_v53 = vmul.f32 1.442695, %v1553_v38 }
 0x241   :  { %970 = vpow2.f32 %v565_v7  ;;  %v591_v54 = vmul.f32 1.442695, %v1554_v4 }
 0x242   :  { %v620_v2 = vpop.xlane.xlu2 %619  ;;  %v630_v8 = vpop.xlane.xlu1 %629 }
 0x243   :  { %v963_v27 = vpop.eup %962  ;;  %v646_v37 = vadd.f32 %v620_v2, %v598_v62  ;;  %v651_v22 = vadd.f32 %v630_v8, %v603_v15  ;;  %v628_v25 = vpop.xlane.xlu0 %627  ;;  %v698_v15 = vld [vmem:[#allocation2 + $0x28] sm:$0xff] }
 0x244   :  { %v965_v36 = vpop.eup %964  ;;  %v734_v47 = vmul.f32 0.6931472, %v963_v27  ;;  %v717_v43 = vld [vmem:[#allocation3 + $0x40] sm:$0xff]  ;;  %v650_v30 = vadd.f32 %v628_v25, %v602_v45 }
 0x245   :  { %v967_v16 = vpop.eup %966  ;;  %972 = vlog2.f32 %v717_v43  ;;  %v710_v46 = vld [vmem:[#allocation3 + $0x8] sm:$0xff]  ;;  %663 = vst.msk [vmem:[#allocation3 + $0x28] sm:$0xff] %vm18_vm8, %v646_v37  ;;  %v596_v20 = vmul.f32 %v965_v36, %v532_v57  ;;  %v1555_v37 = vsub.f32 %v1304_v5, %v1313_v13  ;;  %v540_v57 = vld [vmem:[#allocation3 + $0x58] sm:$0xff] }
 0x246   :  { %v969_v52 = vpop.eup %968  ;;  %v761_v63 = vadd.f32 %v734_v47, %v697_v40  ;;  %v750_v0 = vmul.f32 0.6931472, %v967_v16  ;;  %974 = vlog2.f32 %v710_v46  ;;  %668 = vst.msk [vmem:[#allocation3 + $0x50] sm:$0xff] %vm18_vm8, %v651_v22  ;;  %v702_v40 = vld [vmem:[#allocation2 + $0x48] sm:$0xff] }
 0x247   :  { %667 = vst.msk [vmem:[#allocation3 + $0x48] sm:$0xff] %vm18_vm8, %v650_v30  ;;  %v971_v49 = vpop.eup %970  ;;  %976 = vpow2.f32 %v587_v41  ;;  %v600_v32 = vmul.f32 %v969_v52, %v536_v50  ;;  %v589_v22 = vmul.f32 1.442695, %v1555_v37  ;;  %v703_v41 = vld [vmem:[#allocation2 + $0x50] sm:$0xff]  ;;  %v544_v52 = vld [vmem:[#allocation3 + $0x78] sm:$0xff] }
 0x248   :  { %777 = vst.msk [vmem:[%s1539_s3 + $0x20] sm:$0xff] %vm18_vm8, %v761_v63  ;;  %v769_v56 = vadd.f32 %v750_v0, %v705_v55  ;;  %978 = vpow2.f32 %v573_v1  ;;  %v595_v14 = vmul.f32 %v971_v49, %v531_v24 }
 0x24a   :  { %785 = vst.msk [vmem:[%s1539_s3 + $0x60] sm:$0xff] %vm18_vm8, %v769_v56  ;;  %v616_v48 = vpop.xlane.xlu2 %615  ;;  %v624_v51 = vpop.xlane.xlu1 %623 }
 0x24b   :  { %v973_v60 = vpop.eup %972  ;;  %v644_v19 = vadd.f32 %v616_v48, %v596_v20  ;;  %v648_v26 = vadd.f32 %v624_v51, %v600_v32  ;;  %v614_v42 = vpop.xlane.xlu0 %613  ;;  %v696_v32 = vld [vmem:[#allocation2 + $0x18] sm:$0xff] }
 0x24c   :  { %v975_v17 = vpop.eup %974  ;;  %v742_v11 = vmul.f32 0.6931472, %v973_v60  ;;  %v714_v35 = vld [vmem:[#allocation3 + $0x28] sm:$0xff]  ;;  %v643_v18 = vadd.f32 %v614_v42, %v595_v14  ;;  %v700_v60 = vld [vmem:[#allocation2 + $0x38] sm:$0xff] }
 0x24d   :  { %v728_v39 = vmul.f32 0.6931472, %v975_v17  ;;  %980 = vlog2.f32 %v714_v35  ;;  %v719_v23 = vld [vmem:[#allocation3 + $0x50] sm:$0xff]  ;;  %661 = vst.msk [vmem:[#allocation3 + $0x18] sm:$0xff] %vm18_vm8, %v644_v19  ;;  %v977_v12 = vpop.eup %976 }
 0x24e   :  { %v765_v7 = vadd.f32 %v742_v11, %v701_v3  ;;  %982 = vlog2.f32 %v719_v23  ;;  %v718_v29 = vld [vmem:[#allocation3 + $0x48] sm:$0xff]  ;;  %665 = vst.msk [vmem:[#allocation3 + $0x38] sm:$0xff] %vm18_vm8, %v648_v26  ;;  %v979_v28 = vpop.eup %978  ;;  %v606_v58 = vmul.f32 %v977_v12, %v542_v59  ;;  %v695_v3 = vld [vmem:[#allocation2 + $0x10] sm:$0xff] }
 0x24f   :  { %v758_v21 = vadd.f32 %v728_v39, %v694_v44  ;;  %984 = vlog2.f32 %v718_v29  ;;  %660 = vst.msk [vmem:[#allocation3 + $0x10] sm:$0xff] %vm18_vm8, %v643_v18  ;;  %v599_v6 = vmul.f32 %v979_v28, %v535_v34  ;;  %v543_v35 = vld [vmem:[#allocation3 + $0x70] sm:$0xff]  ;;  %v706_v44 = vld [vmem:[#allocation2 + $0x68] sm:$0xff] }
 0x250   :  { %781 = vst.msk [vmem:[%s1539_s3 + $0x40] sm:$0xff] %vm18_vm8, %v765_v7  ;;  %986 = vpow2.f32 %v583_v53  ;;  %v699_v59 = vld [vmem:[#allocation2 + $0x30] sm:$0xff] }
 0x251   :  { %774 = vst.msk [vmem:[%s1539_s3 + $0x8] sm:$0xff] %vm18_vm8, %v758_v21  ;;  %988 = vpow2.f32 %v591_v54 }
 0x252   :  { %v636_v10 = vpop.xlane.xlu1 %635 }
 0x253   :  { %v981_v31 = vpop.eup %980  ;;  %v654_v9 = vadd.f32 %v636_v10, %v606_v58  ;;  %v622_v45 = vpop.xlane.xlu0 %621 }
 0x254   :  { %v983_v62 = vpop.eup %982  ;;  %v736_v2 = vmul.f32 0.6931472, %v981_v31  ;;  %v712_v8 = vld [vmem:[#allocation3 + $0x18] sm:$0xff]  ;;  %v647_v33 = vadd.f32 %v622_v45, %v599_v6  ;;  %v707_v45 = vld [vmem:[#allocation2 + $0x70] sm:$0xff] }
 0x255   :  { %v985_v27 = vpop.eup %984  ;;  %v746_v25 = vmul.f32 0.6931472, %v983_v62  ;;  %990 = vlog2.f32 %v712_v8  ;;  %v716_v36 = vld [vmem:[#allocation3 + $0x38] sm:$0xff]  ;;  %671 = vst.msk [vmem:[#allocation3 + $0x68] sm:$0xff] %vm18_vm8, %v654_v9 }
 0x256   :  { %v762_v47 = vadd.f32 %v736_v2, %v698_v15  ;;  %v744_v43 = vmul.f32 0.6931472, %v985_v27  ;;  %992 = vlog2.f32 %v716_v36  ;;  %v711_v30 = vld [vmem:[#allocation3 + $0x10] sm:$0xff]  ;;  %v987_v16 = vpop.eup %986  ;;  %664 = vst.msk [vmem:[#allocation3 + $0x30] sm:$0xff] %vm18_vm8, %v647_v33  ;;  %v704_v31 = vld [vmem:[#allocation2 + $0x58] sm:$0xff] }
 0x257   :  { %v767_v46 = vadd.f32 %v746_v25, %v703_v41  ;;  %994 = vlog2.f32 %v711_v30  ;;  %v989_v5 = vpop.eup %988  ;;  %v604_v61 = vmul.f32 %v987_v16, %v540_v57  ;;  %v708_v6 = vld [vmem:[#allocation2 + $0x78] sm:$0xff] }
 0x258   :  { %778 = vst.msk [vmem:[%s1539_s3 + $0x28] sm:$0xff] %vm18_vm8, %v762_v47  ;;  %v766_v13 = vadd.f32 %v744_v43, %v702_v40  ;;  %996 = vpow2.f32 %v589_v22  ;;  %v608_v0 = vmul.f32 %v989_v5, %v544_v52 }
 0x259   :  { %783 = vst.msk [vmem:[%s1539_s3 + $0x50] sm:$0xff] %vm18_vm8, %v767_v46 }
 0x25a   :  { %782 = vst.msk [vmem:[%s1539_s3 + $0x48] sm:$0xff] %vm18_vm8, %v766_v13 }
 0x25b   :  { %v991_v1 = vpop.eup %990  ;;  %v632_v63 = vpop.xlane.xlu2 %631 }
 0x25c   :  { %v993_v50 = vpop.eup %992  ;;  %v732_v55 = vmul.f32 0.6931472, %v991_v1  ;;  %v722_v49 = vld [vmem:[#allocation3 + $0x68] sm:$0xff]  ;;  %v652_v56 = vadd.f32 %v632_v63, %v604_v61  ;;  %v640_v24 = vpop.xlane.xlu0 %639 }
 0x25d   :  { %v995_v20 = vpop.eup %994  ;;  %v740_v48 = vmul.f32 0.6931472, %v993_v50  ;;  %998 = vlog2.f32 %v722_v49  ;;  %v656_v51 = vadd.f32 %v640_v24, %v608_v0  ;;  %v715_v14 = vld [vmem:[#allocation3 + $0x30] sm:$0xff] }
 0x25e   :  { %v760_v19 = vadd.f32 %v732_v55, %v696_v32  ;;  %v730_v26 = vmul.f32 0.6931472, %v995_v20  ;;  %669 = vst.msk [vmem:[#allocation3 + $0x58] sm:$0xff] %vm18_vm8, %v652_v56  ;;  %v997_v17 = vpop.eup %996  ;;  %1000 = vlog2.f32 %v715_v14 }
 0x25f   :  { %v764_v11 = vadd.f32 %v740_v48, %v700_v60  ;;  %673 = vst.msk [vmem:[#allocation3 + $0x78] sm:$0xff] %vm18_vm8, %v656_v51  ;;  %v607_v38 = vmul.f32 %v997_v17, %v543_v35 }
 0x260   :  { %776 = vst.msk [vmem:[%s1539_s3 + $0x18] sm:$0xff] %vm18_vm8, %v760_v19  ;;  %v759_v42 = vadd.f32 %v730_v26, %v695_v3 }
 0x261   :  { %780 = vst.msk [vmem:[%s1539_s3 + $0x38] sm:$0xff] %vm18_vm8, %v764_v11 }
 0x262   :  { %775 = vst.msk [vmem:[%s1539_s3 + $0x10] sm:$0xff] %vm18_vm8, %v759_v42 }
 0x263   :  { %v999_v53 = vpop.eup %998  ;;  %v638_v39 = vpop.xlane.xlu2 %637 }
 0x264   :  { %v752_v23 = vmul.f32 0.6931472, %v999_v53  ;;  %v655_v18 = vadd.f32 %v638_v39, %v607_v38  ;;  %v1001_v12 = vpop.eup %1000 }
 0x265   :  { %v720_v4 = vld [vmem:[#allocation3 + $0x58] sm:$0xff]  ;;  %v738_v7 = vmul.f32 0.6931472, %v1001_v12 }
 0x266   :  { %v770_v54 = vadd.f32 %v752_v23, %v706_v44  ;;  %1002 = vlog2.f32 %v720_v4  ;;  %v724_v29 = vld [vmem:[#allocation3 + $0x78] sm:$0xff]  ;;  %672 = vst.msk [vmem:[#allocation3 + $0x70] sm:$0xff] %vm18_vm8, %v655_v18 }
 0x267   :  { %1004 = vlog2.f32 %v724_v29  ;;  %v763_v21 = vadd.f32 %v738_v7, %v699_v59 }
 0x268   :  { %786 = vst.msk [vmem:[%s1539_s3 + $0x68] sm:$0xff] %vm18_vm8, %v770_v54 }
 0x269   :  { %779 = vst.msk [vmem:[%s1539_s3 + $0x30] sm:$0xff] %vm18_vm8, %v763_v21 }
 0x26c   :  { %v1003_v28 = vpop.eup %1002 }
 0x26d   :  { %v1005_v34 = vpop.eup %1004  ;;  %v748_v58 = vmul.f32 0.6931472, %v1003_v28  ;;  %v723_v10 = vld [vmem:[#allocation3 + $0x70] sm:$0xff] }
 0x26e   :  { %v756_v9 = vmul.f32 0.6931472, %v1005_v34  ;;  %1006 = vlog2.f32 %v723_v10 }
 0x26f   :  { %v768_v62 = vadd.f32 %v748_v58, %v704_v31 }
 0x270   :  { %v772_v15 = vadd.f32 %v756_v9, %v708_v6 }
 0x271   :  { %784 = vst.msk [vmem:[%s1539_s3 + $0x58] sm:$0xff] %vm18_vm8, %v768_v62 }
 0x272   :  { %788 = vst.msk [vmem:[%s1539_s3 + $0x78] sm:$0xff] %vm18_vm8, %v772_v15 }
 0x274   :  { %v1007_v2 = vpop.eup %1006 }
 0x275   :  { %v754_v8 = vmul.f32 0.6931472, %v1007_v2 }
 0x277   :  { %v771_v27 = vadd.f32 %v754_v8, %v707_v45 }
 0x279   :  { %787 = vst.msk [vmem:[%s1539_s3 + $0x70] sm:$0xff] %vm18_vm8, %v771_v27 }

</bundles_post_ra>
